<compile_context>
chip_gen: v7x
topology: tpu7x:2x2x1
jax: 0.10.0
libtpu: 0.0.40
codegen_flags: <defaults>
</compile_context>

<pallas_src>
import numpy as np
import jax
import jax.numpy as jnp
from jax.experimental import pallas as pl
from jax.experimental.pallas import tpu as pltpu


def _sigmoid(v):
    # explicit form: exp goes to the EUP, add/div to the VPU
    return 1.0 / (1.0 + jnp.exp(-v))


def dagma_mlp_kernel(flag_ref, x_ref, w0_ref, b0_ref, w1_ref, b1_ref, out_ref):
    # flag_ref: (1,) int32 in SMEM -- 1 iff all entries of x are 0 or 1
    # x_ref : (TN, D)        w0_ref: (D, D*M1)   b0_ref: (1, D*M1)
    # w1_ref: (D*M1, D)      b1_ref: (1, D)      out_ref: (TN, D)
    x = x_ref[...]

    # Layer 0: one lane-dense MXU matmul, result (TN, D*M1).
    h = jnp.dot(x, w0_ref[...], preferred_element_type=jnp.float32) + b0_ref[...]
    h = _sigmoid(h)                                   # activation='sigmoid'

    # Layer 1: block-diagonal MXU matmul replaces the per-column segmented sum.
    y = jnp.dot(h, w1_ref[...], preferred_element_type=jnp.float32) + b1_ref[...]

    # Trailing sigmoid only when the whole input is binary (torch.all semantics).
    @pl.when(flag_ref[0] == 1)
    def _():
        out_ref[...] = _sigmoid(y)

    @pl.when(flag_ref[0] == 0)
    def _():
        out_ref[...] = y


def _pick_batch_tile(N):
    # Largest divisor of N that is <= 512 while keeping >= 2 grid steps
    # (so the v7x megacore has work on both TensorCores).  On v5e/v6e the
    # "parallel" axis is simply a short loop.
    if N < 16:
        return N
    target = min(max(N // 2, 8), 512)
    for cand in range(target, 0, -1):
        if N % cand == 0:
            return cand
    return N


def dagma_mlp_forward(x, w0, b0, w1, b1, *, tn=None):
    """x: (N, D); w0: (D, M1, D); b0: (D, M1); w1: (D, M1); b1: (1, D)."""
    N, D = x.shape
    Dw, M1, Din = w0.shape
    assert Dw == D and Din == D
    DM = D * M1

    if tn is None:
        tn = _pick_batch_tile(N)
    assert N % tn == 0, "batch must be a multiple of the batch tile"

    # --- wrapper-side weight repacking (lets both layers run on the MXU) ---
    # W0_2d[d, i*M1+m] = w0[i, m, d]   (torch Linear: h = x @ W.T + b)
    w0_2d = jnp.transpose(w0, (2, 0, 1)).reshape(D, DM)
    b0_2d = b0.reshape(1, DM)
    # Block-diagonal W1: column i holds w1[i, :] in rows i*M1:(i+1)*M1.
    w1_bd = (w1[:, :, None] * jnp.eye(D, dtype=w1.dtype)[:, None, :]).reshape(DM, D)
    b1_2d = b1.reshape(1, D)

    # binary = torch.all((x == 0) | (x == 1)) -- cheap global reduction in glue JAX.
    # TODO(synk): for very large N fuse this reduction into the kernel to avoid a
    # second full HBM pass over x; negligible at these sizes.
    flag = jnp.all((x == 0) | (x == 1)).astype(jnp.int32).reshape(1)

    return pl.pallas_call(
        dagma_mlp_kernel,
        out_shape=jax.ShapeDtypeStruct((N, D), jnp.float32),
        grid_spec=pltpu.PrefetchScalarGridSpec(
            num_scalar_prefetch=1,
            grid=(N // tn,),
            in_specs=[
                pl.BlockSpec((tn, D), lambda n, flag: (n, 0)),    # x tile
                # Weights stay resident (constant block index across the batch grid).
                # TODO(synk): for realistic DAGMA sizes (D in the hundreds) tile the
                # column axis and single-buffer the weight specs so w0 fits v7x's
                # 64 MiB VMEM; at these sizes the resident blocks are a few KiB.
                pl.BlockSpec((D, DM), lambda n, flag: (0, 0)),    # W0_2d
                pl.BlockSpec((1, DM), lambda n, flag: (0, 0)),    # b0_2d
                pl.BlockSpec((DM, D), lambda n, flag: (0, 0)),    # W1 block-diag
                pl.BlockSpec((1, D), lambda n, flag: (0, 0)),     # b1
            ],
            out_specs=pl.BlockSpec((tn, D), lambda n, flag: (n, 0)),
        ),
        compiler_params=pltpu.CompilerParams(
            dimension_semantics=("parallel",),
            vmem_limit_bytes=64 << 20,
        ),
    )(flag, x, w0_2d, b0_2d, w1_bd, b1_2d)


def reference_forward(x, w0, b0, w1, b1):
    x = np.asarray(x, np.float32)
    h = 1.0 / (1.0 + np.exp(-(np.einsum("nd,imd->nim", x, np.asarray(w0)) + np.asarray(b0)[None])))
    y = np.sum(h * np.asarray(w1)[None], axis=-1) + np.asarray(b1).reshape(1, -1)
    if np.all((x == 0) | (x == 1)):
        y = 1.0 / (1.0 + np.exp(-y))
    return y


if __name__ == "__main__":
    # dims = [d, m1, 1] as in DagmaMLP(dims); small shapes.
    D, M1, N = 8, 32, 64

    key = jax.random.PRNGKey(0)
    kx, k0, kb0, k1, kb1, kbin = jax.random.split(key, 6)

    # NOTE: the module's __init__ zero-inits layer-0 weights/biases; we use small
    # deterministic random values instead so the matmul hot path is non-degenerate
    # (forward semantics are identical for any weight values).
    w0 = 0.1 * jax.random.normal(k0, (D, M1, D), dtype=jnp.float32)   # per-column Linear(d, m1).weight
    b0 = 0.1 * jax.random.normal(kb0, (D, M1), dtype=jnp.float32)     # per-column Linear(d, m1).bias
    w1 = 0.1 * jax.random.normal(k1, (D, M1), dtype=jnp.float32)      # per-column Linear(m1, 1).weight
    b1 = 0.1 * jax.random.normal(kb1, (1, D), dtype=jnp.float32)      # per-column Linear(m1, 1).bias

    # Case 1: continuous input (no trailing sigmoid).
    x_cont = jax.random.normal(kx, (N, D), dtype=jnp.float32)
    out_cont = jax.block_until_ready(dagma_mlp_forward(x_cont, w0, b0, w1, b1))
    ref_cont = reference_forward(x_cont, w0, b0, w1, b1)

    # Case 2: binary {0,1} input (trailing sigmoid applied).
    x_bin = (jax.random.uniform(kbin, (N, D)) > 0.5).astype(jnp.float32)
    out_bin = jax.block_until_ready(dagma_mlp_forward(x_bin, w0, b0, w1, b1))
    ref_bin = reference_forward(x_bin, w0, b0, w1, b1)

    assert out_cont.shape == (N, D) and out_bin.shape == (N, D)
    np.testing.assert_allclose(np.asarray(out_cont), ref_cont, rtol=1e-4, atol=1e-4)
    np.testing.assert_allclose(np.asarray(out_bin), ref_bin, rtol=1e-4, atol=1e-4)

    print("KERNEL_OK")
</pallas_src>

<mosaic_0001>
module attributes {stable_mosaic.version = 11 : i64} {
  func.func @dagma_mlp_kernel(%arg0: i32, %arg1: memref<1xi32, #tpu.memory_space<smem>>, %arg2: memref<32x8xf32, #tpu.memory_space<vmem>>, %arg3: memref<8x256xf32, #tpu.memory_space<vmem>>, %arg4: memref<1x256xf32, #tpu.memory_space<vmem>>, %arg5: memref<256x8xf32, #tpu.memory_space<vmem>>, %arg6: memref<1x8xf32, #tpu.memory_space<vmem>>, %arg7: memref<32x8xf32, #tpu.memory_space<vmem>>) attributes {dimension_semantics = [#tpu.dimension_semantics<parallel>], iteration_bounds = array<i64: 2>, scalar_prefetch = 1 : i64, scratch_operands = 0 : i64, tpu.core_type = #tpu.core_type<tc>, window_params = [{transform_indices = @transform_0, window_bounds = array<i64: 32, 8>}, {pipeline_mode = #tpu.pipeline_mode<synchronous>, transform_indices = @transform_1, window_bounds = array<i64: 8, 256>}, {pipeline_mode = #tpu.pipeline_mode<synchronous>, transform_indices = @transform_2, window_bounds = array<i64: 1, 256>}, {pipeline_mode = #tpu.pipeline_mode<synchronous>, transform_indices = @transform_3, window_bounds = array<i64: 256, 8>}, {pipeline_mode = #tpu.pipeline_mode<synchronous>, transform_indices = @transform_4, window_bounds = array<i64: 1, 8>}, {transform_indices = @transform_5, window_bounds = array<i64: 32, 8>}]} {
    %c0 = arith.constant 0 : index
    %c0_0 = arith.constant 0 : index
    %0 = vector.load %arg2[%c0, %c0_0] : memref<32x8xf32, #tpu.memory_space<vmem>>, vector<32x8xf32>
    %c0_1 = arith.constant 0 : index
    %c0_2 = arith.constant 0 : index
    %1 = vector.load %arg3[%c0_1, %c0_2] : memref<8x256xf32, #tpu.memory_space<vmem>>, vector<8x256xf32>
    %cst = arith.constant dense<0.000000e+00> : vector<32x256xf32>
    %2 = tpu.matmul %0, %1, %cst {dimension_numbers = #tpu.dot_dimension_numbers<[1], [0], [0], [1], [0, 0, 1, 1], [], []>} : vector<32x8xf32>, vector<8x256xf32>, vector<32x256xf32> -> vector<32x256xf32>
    %c0_3 = arith.constant 0 : index
    %c0_4 = arith.constant 0 : index
    %3 = vector.load %arg4[%c0_3, %c0_4] : memref<1x256xf32, #tpu.memory_space<vmem>>, vector<1x256xf32>
    %4 = vector.broadcast %3 : vector<1x256xf32> to vector<32x256xf32>
    %5 = arith.addf %2, %4 : vector<32x256xf32>
    %cst_5 = arith.constant 0.000000e+00 : f32
    %6 = vector.broadcast %cst_5 : f32 to vector<32x256xf32>
    %7 = arith.subf %6, %5 : vector<32x256xf32>
    %8 = math.exp %7 : vector<32x256xf32>
    %cst_6 = arith.constant 1.000000e+00 : f32
    %9 = vector.broadcast %cst_6 : f32 to vector<32x256xf32>
    %10 = arith.addf %9, %8 : vector<32x256xf32>
    %cst_7 = arith.constant 1.000000e+00 : f32
    %11 = vector.broadcast %cst_7 : f32 to vector<32x256xf32>
    %12 = arith.divf %11, %10 : vector<32x256xf32>
    %c0_8 = arith.constant 0 : index
    %c0_9 = arith.constant 0 : index
    %13 = vector.load %arg5[%c0_8, %c0_9] : memref<256x8xf32, #tpu.memory_space<vmem>>, vector<256x8xf32>
    %cst_10 = arith.constant dense<0.000000e+00> : vector<32x8xf32>
    %14 = tpu.matmul %12, %13, %cst_10 {dimension_numbers = #tpu.dot_dimension_numbers<[1], [0], [0], [1], [0, 0, 1, 1], [], []>} : vector<32x256xf32>, vector<256x8xf32>, vector<32x8xf32> -> vector<32x8xf32>
    %c0_11 = arith.constant 0 : index
    %c0_12 = arith.constant 0 : index
    %15 = vector.load %arg6[%c0_11, %c0_12] : memref<1x8xf32, #tpu.memory_space<vmem>>, vector<1x8xf32>
    %16 = vector.broadcast %15 : vector<1x8xf32> to vector<32x8xf32>
    %17 = arith.addf %14, %16 : vector<32x8xf32>
    %c0_13 = arith.constant 0 : index
    %18 = memref.load %arg1[%c0_13] : memref<1xi32, #tpu.memory_space<smem>>
    %c1_i32 = arith.constant 1 : i32
    %19 = arith.cmpi eq, %18, %c1_i32 : i32
    %20 = arith.extui %19 : i1 to i32
    %c0_i32 = arith.constant 0 : i32
    %21 = arith.cmpi ne, %20, %c0_i32 : i32
    scf.if %21 {
      %cst_17 = arith.constant 0.000000e+00 : f32
      %26 = vector.broadcast %cst_17 : f32 to vector<32x8xf32>
      %27 = arith.subf %26, %17 : vector<32x8xf32>
      %28 = math.exp %27 : vector<32x8xf32>
      %cst_18 = arith.constant 1.000000e+00 : f32
      %29 = vector.broadcast %cst_18 : f32 to vector<32x8xf32>
      %30 = arith.addf %29, %28 : vector<32x8xf32>
      %cst_19 = arith.constant 1.000000e+00 : f32
      %31 = vector.broadcast %cst_19 : f32 to vector<32x8xf32>
      %32 = arith.divf %31, %30 : vector<32x8xf32>
      %c0_20 = arith.constant 0 : index
      %c0_21 = arith.constant 0 : index
      %33 = vector.load %arg7[%c0_20, %c0_21] : memref<32x8xf32, #tpu.memory_space<vmem>>, vector<32x8xf32>
      tpu.vector_store %arg7[%c0_20, %c0_21], %32 {strides = array<i32>} : memref<32x8xf32, #tpu.memory_space<vmem>>, vector<32x8xf32>,
    } else {
    }
    %c0_14 = arith.constant 0 : index
    %22 = memref.load %arg1[%c0_14] : memref<1xi32, #tpu.memory_space<smem>>
    %c0_i32_15 = arith.constant 0 : i32
    %23 = arith.cmpi eq, %22, %c0_i32_15 : i32
    %24 = arith.extui %23 : i1 to i32
    %c0_i32_16 = arith.constant 0 : i32
    %25 = arith.cmpi ne, %24, %c0_i32_16 : i32
    scf.if %25 {
      %c0_17 = arith.constant 0 : index
      %c0_18 = arith.constant 0 : index
      %26 = vector.load %arg7[%c0_17, %c0_18] : memref<32x8xf32, #tpu.memory_space<vmem>>, vector<32x8xf32>
      tpu.vector_store %arg7[%c0_17, %c0_18], %17 {strides = array<i32>} : memref<32x8xf32, #tpu.memory_space<vmem>>, vector<32x8xf32>,
    } else {
    }
    return
  }
  func.func @transform_0(%arg0: i32, %arg1: memref<1xi32, #tpu.memory_space<smem>>) -> (i32, i32) {
    %c0_i32 = arith.constant 0 : i32
    %c0_i32_0 = arith.constant 0 : i32
    return %arg0, %c0_i32 : i32, i32
  }
  func.func @transform_1(%arg0: i32, %arg1: memref<1xi32, #tpu.memory_space<smem>>) -> (i32, i32) {
    %c0_i32 = arith.constant 0 : i32
    %c0_i32_0 = arith.constant 0 : i32
    %c0_i32_1 = arith.constant 0 : i32
    return %c0_i32, %c0_i32_0 : i32, i32
  }
  func.func @transform_2(%arg0: i32, %arg1: memref<1xi32, #tpu.memory_space<smem>>) -> (i32, i32) {
    %c0_i32 = arith.constant 0 : i32
    %c0_i32_0 = arith.constant 0 : i32
    %c0_i32_1 = arith.constant 0 : i32
    return %c0_i32, %c0_i32_0 : i32, i32
  }
  func.func @transform_3(%arg0: i32, %arg1: memref<1xi32, #tpu.memory_space<smem>>) -> (i32, i32) {
    %c0_i32 = arith.constant 0 : i32
    %c0_i32_0 = arith.constant 0 : i32
    %c0_i32_1 = arith.constant 0 : i32
    return %c0_i32, %c0_i32_0 : i32, i32
  }
  func.func @transform_4(%arg0: i32, %arg1: memref<1xi32, #tpu.memory_space<smem>>) -> (i32, i32) {
    %c0_i32 = arith.constant 0 : i32
    %c0_i32_0 = arith.constant 0 : i32
    %c0_i32_1 = arith.constant 0 : i32
    return %c0_i32, %c0_i32_0 : i32, i32
  }
  func.func @transform_5(%arg0: i32, %arg1: memref<1xi32, #tpu.memory_space<smem>>) -> (i32, i32) {
    %c0_i32 = arith.constant 0 : i32
    %c0_i32_0 = arith.constant 0 : i32
    return %arg0, %c0_i32 : i32, i32
  }
}

</mosaic_0001>

<bundles_post_ra>
// kernel: tpu_custom_call.1
= control target key start
LH: loop header
LB: loop body
LE: loop exit
PB: predicated region body
PF: predicated region fallthrough
CT: control target
= control target key end

     0   :  { %s1594_s0 = inlined_call_operand.<no memory space> [shape: s32[1], index: 0, kind: input, shape index: {}]   ;;  %s1595_s1 = inlined_call_operand.hbm [shape: f32[64,8], index: 1, kind: input, shape index: {}]   ;;  %s1596_s2 = inlined_call_operand.hbm [shape: f32[8,256], index: 2, kind: input, shape index: {}]   ;;  %s1597_s3 = inlined_call_operand.hbm [shape: f32[1,256], index: 3, kind: input, shape index: {}]   ;;  %s1598_s4 = inlined_call_operand.hbm [shape: f32[256,8], index: 4, kind: input, shape index: {}]   ;;  %s1599_s5 = inlined_call_operand.hbm [shape: f32[1,8], index: 5, kind: input, shape index: {}]   ;;  %s1600_s6 = inlined_call_operand.hbm [shape: f32[64,8], index: 6, kind: output, shape index: {}]  }
   0x1   :  { %11 = sst [smem:[#allocation3]] %s1594_s0 }
   0x2   :  { %12 = vsyncpa [#allocation5], 0 }
   0x3   :  { %14 = vsyncpa [#allocation5 + $0x1], 0 }
   0x4   :  { %15 = vsyncpa [#allocation8], 0 }
   0x5   :  { %16 = vsyncpa [#allocation11], 0 }
   0x6   :  { %17 = vsyncpa [#allocation6], 0 }
   0x7   :  { %19 = vsyncpa [#allocation6 + $0x1], 0  ;;  %s1288_s23 = smov 0   ;;  %s1290_s24 = smov 0  }
   0x8   :  { %s1292_s25 = smov 0   ;;  %s1294_s26 = smov 0  }
   0x9 LB: > { %s1309_s0 = sadd.s32 4294967295, %s1237_s26   ;;  %s758_s27 = sadd.s32 4294967294, %s1237_s26   ;;  %s1237_s26 = sphi %s1294_s26, %s1623_s26   ;;  %s1233_s25 = sphi %s1292_s25, %s1622_s25   ;;  %s1229_s24 = sphi %s1290_s24, %s1621_s24   ;;  %s1225_s23 = sphi %s1288_s23, %s1620_s23  }
   0xa   : > { %p45_p0 = scmp.ne.s32.totalorder %s1229_s24, %s1225_s23  ;;  %p1601_p1 = scmp.eq.s32.totalorder %s1309_s0, 0 }
   0xb   : > { %p159_p3 = scmp.eq.s32.totalorder %s758_s27, 1  ;;  %p759_p5 = scmp.ge.s32.totalorder %s1237_s26, 1 }
   0xc   : > { %p1318_p4 = por %p1601_p1, %p45_p0  ;;  %p166_p7 = scmp.lt.s32.totalorder %s1237_s26, 3 }
   0xd   : > { %p1323_p6 = por %p159_p3, %p45_p0  ;;  %s1239_s7 = smov [#allocation7]  }
   0xe   : > { %s1604_s28 = scalar_select %p1318_p4, 1, 0 }
   0xf   : > { %s1605_s29 = scalar_select %p1323_p6, 1, 0 }
  0x10   : > { %p1328_p8 = pnand %p759_p5, %p166_p7  ;;  %s179_s8 = sshll.u32 %s1239_s7, 4  ;;  %s180_s8 = int_to_ptr.vmem [resolvable:$true] %s179_s8 }
  0x11   : > { %s1240_s9 = smov [#allocation10]   ;;  %s1241_s12 = smov [#allocation9]  }
  0x12   : > { %s1606_s30 = scalar_select %p1328_p8, 1, 0 }
  0x13   : > { %p901_p10 = pneg %p1328_p8  ;;  %s200_s10 = sshll.u32 %s1240_s9, 4  ;;  %s1341_s10 = int_to_ptr.vmem [resolvable:$true] %s200_s10 }
  0x14   : > { %s1343_s13 = sshll.u32 %s1241_s12, 4  ;;  %s1021_s16 = scalar_lea.hbm %s1596_s2, 256  ;;  %s191_s13 = int_to_ptr.vmem [resolvable:$true] %s1343_s13 }
  0x15   : > { %p1337_p11 = pnand %p901_p10, %p1601_p1  ;;  %p1022_p12 = scmp.ne.s32.totalorder %s1596_s2, %s1021_s16 }
  0x16   : > { %p1028_p5 = scmp.lt.u32.totalorder %s1021_s16, %s1596_s2 }
  0x17   : > { %p1353_p13 = pneg %p1337_p11 }
  0x19   : > { %p1024_p0 = pnand %p1353_p13, %p1022_p12 }
  0x1b   : > { %p1025_p3 = pneg %p1024_p0 }
  0x1d   : > { %p1030_p7 = pnand %p1028_p5, %p1025_p3 }
  0x1f   : > { %1033 = shalt.err (!%p1030_p7)
}
  0x20   : > { %s1034_s22 = scalar_lea.vmem %s180_s8, 256  ;;  %p1042_p2 = scmp.lt.s32.totalorder %s180_s8, %s180_s8 }
  0x21   : > { %p1035_p10 = scmp.ne.s32.totalorder %s180_s8, %s1034_s22  ;;  %p1043_p6 = scmp.lt.s32.totalorder %s1034_s22, %s1034_s22 }
  0x23   : > { %p1037_p9 = pnand %p1035_p10, %p1353_p13  ;;  %p1044_p4 = por %p1043_p6, %p1042_p2 }
  0x25   : > { %p1038_p1 = pneg %p1037_p9 }
  0x27   : > { %p1045_p8 = pnand %p1044_p4, %p1038_p1 }
  0x29   : > { %1048 = shalt.err (!%p1045_p8)
}
  0x2a   : > { %904 = dma.hbm_to_vmem [thread:$0]  (!%p1337_p11), %s1596_s2, 256, %s180_s8, [#allocation8]  }
  0x2b   : > { %s1049_s14 = scalar_lea.hbm %s1598_s4, 4096 }
  0x2c   : > { %p1050_p9 = scmp.ne.s32.totalorder %s1598_s4, %s1049_s14  ;;  %p1056_p1 = scmp.lt.u32.totalorder %s1049_s14, %s1598_s4 }
  0x2e   : > { %p1052_p12 = pnand %p1050_p9, %p1353_p13 }
  0x30   : > { %p1053_p2 = pneg %p1052_p12 }
  0x32   : > { %p1058_p4 = pnand %p1056_p1, %p1053_p2 }
  0x34   : > { %1061 = shalt.err (!%p1058_p4)
}
  0x35   : > { %s1062_s8 = scalar_lea.vmem %s1341_s10, 4096  ;;  %p1070_p3 = scmp.lt.s32.totalorder %s1341_s10, %s1341_s10 }
  0x36   : > { %p1063_p6 = scmp.ne.s32.totalorder %s1341_s10, %s1062_s8  ;;  %p1071_p5 = scmp.lt.s32.totalorder %s1062_s8, %s1062_s8 }
  0x38   : > { %p1065_p8 = pnand %p1063_p6, %p1353_p13  ;;  %p1072_p7 = por %p1071_p5, %p1070_p3 }
  0x3a   : > { %p1066_p0 = pneg %p1065_p8 }
  0x3c   : > { %p1073_p10 = pnand %p1072_p7, %p1066_p0 }
  0x3e   : > { %1076 = shalt.err (!%p1073_p10)
}
  0x3f   : > { %s1242_s20 = smov 128   ;;  %s1243_s21 = smov 8  }
  0x40   : > { %910 = dma.hbm_to_vmem [thread:$0]  (!%p1337_p11), %s1598_s4, 4096, %s1341_s10, [#allocation11], %s1242_s20, %s1242_s20, %s1243_s21  }
  0x41   : > { %s1077_s12 = scalar_lea.hbm %s1597_s3, 32 }
  0x42   : > { %p1078_p9 = scmp.ne.s32.totalorder %s1597_s3, %s1077_s12  ;;  %p1084_p1 = scmp.lt.u32.totalorder %s1077_s12, %s1597_s3 }
  0x44   : > { %p1080_p12 = pnand %p1078_p9, %p1353_p13 }
  0x46   : > { %p1081_p2 = pneg %p1080_p12 }
  0x48   : > { %p1086_p4 = pnand %p1084_p1, %p1081_p2 }
  0x4a   : > { %1089 = shalt.err (!%p1086_p4)
}
  0x4b   : > { %s1090_s18 = scalar_lea.vmem %s191_s13, 32  ;;  %p1098_p3 = scmp.lt.s32.totalorder %s191_s13, %s191_s13 }
  0x4c   : > { %p1091_p6 = scmp.ne.s32.totalorder %s191_s13, %s1090_s18  ;;  %p1099_p5 = scmp.lt.s32.totalorder %s1090_s18, %s1090_s18 }
  0x4e   : > { %p1093_p8 = pnand %p1091_p6, %p1353_p13  ;;  %p1100_p7 = por %p1099_p5, %p1098_p3 }
  0x50   : > { %p1094_p0 = pneg %p1093_p8 }
  0x52   : > { %p1101_p10 = pnand %p1100_p7, %p1094_p0 }
  0x54   : > { %1104 = shalt.err (!%p1101_p10)
}
  0x55   : > { %907 = dma.hbm_to_vmem [thread:$0]  (!%p1337_p11), %s1597_s3, 32, %s191_s13, [#allocation8]  }
  0x56   : > { %s1244_s22 = smov [#allocation12]   ;;  %s1105_s12 = scalar_lea.hbm %s1599_s5, 16 }
  0x57   : > { %s214_s27 = sshll.u32 %s1244_s22, 4  ;;  %p1106_p9 = scmp.ne.s32.totalorder %s1599_s5, %s1105_s12  ;;  %s215_s27 = int_to_ptr.vmem [resolvable:$true] %s214_s27 }
  0x58   : > { %p1112_p1 = scmp.lt.u32.totalorder %s1105_s12, %s1599_s5 }
  0x59   : > { %p1108_p12 = pnand %p1106_p9, %p1353_p13 }
  0x5b   : > { %p1109_p2 = pneg %p1108_p12 }
  0x5d   : > { %p1114_p4 = pnand %p1112_p1, %p1109_p2 }
  0x5f   : > { %1117 = shalt.err (!%p1114_p4)
}
  0x60   : > { %s1118_s13 = scalar_lea.vmem %s215_s27, 16  ;;  %s1125_s18 = scalar_lea.vmem %s215_s27, 32 }
  0x61   : > { %p1119_p6 = scmp.ne.s32.totalorder %s215_s27, %s1118_s13  ;;  %p1126_p3 = scmp.lt.s32.totalorder %s215_s27, %s215_s27 }
  0x62   : > { %p1127_p5 = scmp.lt.s32.totalorder %s1125_s18, %s1118_s13 }
  0x63   : > { %p1121_p8 = pnand %p1119_p6, %p1353_p13 }
  0x64   : > { %p1128_p7 = por %p1127_p5, %p1126_p3 }
  0x65   : > { %p1122_p0 = pneg %p1121_p8 }
  0x67   : > { %p1129_p10 = pnand %p1128_p7, %p1122_p0 }
  0x69   : > { %1132 = shalt.err (!%p1129_p10)
}
  0x6a   : > { %913 = dma.hbm_to_vmem [thread:$0]  (!%p1337_p11), %s1599_s5, 16, %s215_s27, [#allocation11]  }
  0x6b   : > { %s1433_s19 = sadd.s32 1, %s1237_s26   ;;  %s32_s22 = sadd.s32 1, %s1233_s25 }
  0x6c   : > { %s29_s11 = ssub.s32 %s1237_s26, %s1433_s19  ;;  %p39_p13 = scmp.ne.s32.totalorder %s1233_s25, %s1229_s24 }
  0x6d   : > { %p30_p9 = scmp.eq.s32.totalorder %s29_s11, 0  ;;  %p40_p12 = scmp.eq.s32.totalorder %s1237_s26, 0 }
  0x6e   : > { %p1609_p2 = scmp.eq.s32.totalorder %s1309_s0, 1  ;;  %p926_p4 = scmp.lt.s32.totalorder %s1237_s26, 2 }
  0x6f   : > { %s1449_s9 = scalar_select %p30_p9, %s1233_s25, %s32_s22  }
  0x70   : > { %p1443_p1 = por %p1609_p2, %p39_p13  ;;  %p41_p6 = por %p40_p12, %p39_p13 }
  0x71   : > { %s225_s12 = sand.u32 1, %s1233_s25   ;;  %s787_s27 = sshll.u32 %s1237_s26, 9 }
  0x72   : > { %s765_s14 = sshll.u32 %s225_s12, 5  ;;  %s1456_s17 = scalar_lea.hbm %s1595_s1, %s787_s27 }
  0x73   : > { %s229_s13 = scalar_lea.vmem [#allocation4], %s765_s14  ;;  %p1460_p11 = pnand %p926_p4, %p41_p6 }
  0x74   : > { %s236_s18 = sshll.u32 %s229_s13, 4  ;;  %s1464_s8 = scalar_lea.sflag [#allocation5], %s225_s12  ;;  %s1458_s18 = int_to_ptr.vmem [resolvable:$true] %s236_s18 }
  0x75   : > { %s1133_s22 = scalar_lea.hbm %s1456_s17, 512  ;;  %p1135_p0 = pneg %p1460_p11 }
  0x76   : > { %p1134_p8 = scmp.ne.s32.totalorder %s1456_s17, %s1133_s22  ;;  %s1138_s27 = scalar_lea.hbm %s1595_s1, 1024 }
  0x77   : > { %p1139_p7 = scmp.lt.u32.totalorder %s1456_s17, %s1595_s1  ;;  %p1140_p10 = scmp.lt.u32.totalorder %s1138_s27, %s1133_s22 }
  0x78   : > { %p1136_p3 = pnand %p1135_p0, %p1134_p8  ;;  %p1142_p9 = scmp.lt.u32.totalorder %s1133_s22, %s1456_s17 }
  0x79   : > { %p1141_p13 = por %p1140_p10, %p1139_p7 }
  0x7a   : > { %p1137_p5 = pneg %p1136_p3 }
  0x7b   : > { %p1143_p12 = por %p1142_p9, %p1141_p13 }
  0x7d   : > { %p1144_p2 = pnand %p1143_p12, %p1137_p5 }
  0x7f   : > { %1147 = shalt.err (!%p1144_p2)
}
  0x80   : > { %s1148_s12 = scalar_lea.vmem %s1458_s18, 512  ;;  %s1245_s13 = smov [#allocation4]  }
  0x81   : > { %p1149_p4 = scmp.ne.s32.totalorder %s1458_s18, %s1148_s12  ;;  %s1153_s11 = sshll.u32 %s1245_s13, 4  ;;  %s1154_s11 = int_to_ptr.vmem [resolvable:$false] %s1153_s11 }
  0x82   : > { %s1155_s14 = scalar_lea.vmem %s1154_s11, 1024  ;;  %p1156_p3 = scmp.lt.s32.totalorder %s1458_s18, %s1154_s11 }
  0x83   : > { %p1151_p6 = pnand %p1149_p4, %p1135_p0  ;;  %p1157_p7 = scmp.lt.s32.totalorder %s1155_s14, %s1148_s12 }
  0x85   : > { %p1152_p8 = pneg %p1151_p6  ;;  %p1158_p10 = por %p1157_p7, %p1156_p3 }
  0x87   : > { %p1159_p13 = pnand %p1158_p10, %p1152_p8 }
  0x89   : > { %1162 = shalt.err (!%p1159_p13)
}
  0x8a   : > { %917 = dma.hbm_to_vmem [thread:$0]  (!%p1460_p11), %s1456_s17, 512, %s1458_s18, %s1464_s8, %s1242_s20, %s1242_s20, %s1243_s21  }
  0x8b   : > { %p1612_p0 = scmp.ne.s32.totalorder %s1606_s30, 0 }
  0x8c   : > { %s1498_s22 = sand.u32 (!%p1612_p0), 1, %s1229_s24   ;;  %p1613_p5 = scmp.ne.s32.totalorder (!%p1612_p0), %s1604_s28, 0 }
  0x8d   : > { %248 = sbr.rel (%p1612_p0) target bundleno = 703 (0x2bf), region = 40  ;;  %s769_s27 = sshll.u32 (!%p1612_p0), %s1498_s22, 5 }
  0x8e   : > { %s251_s15 = scalar_lea.sflag (!%p1612_p0), [#allocation5], %s1498_s22  ;;  %s254_s10 = scalar_lea.vmem (!%p1612_p0), [#allocation4], %s769_s27 }
  0x94   : > { %1208 = dma.done.wait (%p1613_p5), %s251_s15, 512  }
  0x95   : > { %1210 = vsyncadd (%p1613_p5), %s251_s15, 4294966784  ;;  %p1614_p11 = scmp.eq.s32.totalorder %s1309_s0, 0 }
  0x97   : > { %1212 = dma.done.wait (%p1614_p11), [#allocation8], 288   ;;  %p1615_p9 = pmov %p1614_p11 }
  0x99   : > { %1214 = vsyncadd (%p1615_p9), [#allocation8], 4294967008  ;;  %p1616_p12 = pmov %p1615_p9 }
  0x9a   : > { %p1617_p2 = pmov %p1615_p9 }
  0x9b   : > { %1216 = dma.done.wait (%p1616_p12), [#allocation11], 4112  }
  0x9c   : > { %1218 = vsyncadd (%p1617_p2), [#allocation11], 4294963184  ;;  %s1516_s30 = sld [smem:[#allocation3]]  ;;  %v1246_v0 = vmov 0.0   ;;  %v304_v1 = vld [vmem:[#allocation7 + $0x8] sm:$0xff]  ;;  %v303_v2 = vld [vmem:[#allocation7] sm:$0xff]  ;;  %v307_v55 = vlaneseq }
  0x9d   : > { %394 = vmatprep.mubr.f32.mxu0 %v1246_v0  ;;  %v299_v3 = vld [vmem:[%s254_s10] sm:$0xff]  ;;  %vm317_vm0 = vcmask 64512   ;;  %330 = vmatprep.subr.mxu0 %v304_v1  ;;  %v300_v4 = vld [vmem:[%s254_s10 + $0x8] sm:$0xff]  ;;  %v301_v5 = vld [vmem:[%s254_s10 + $0x10] sm:$0xff]  ;;  %s1524_s28 = scalar_lea.vmem [#allocation13], %s769_s27 }
  0x9e   : > { %331 = vmatpush1.msra.mxu0 %v303_v2  ;;  %v302_v6 = vld [vmem:[%s254_s10 + $0x18] sm:$0xff]  ;;  %v485_v13 = vld [vmem:[#allocation10 + $0x90] sm:$0xff]  ;;  %v486_v14 = vld [vmem:[#allocation10 + $0x98] sm:$0xff]  ;;  %v308_v56 = vshrl.u32 %v307_v55, 7 }
  0x9f   : > { %775 = vmatmul.mubr.msk.f32.vlgmr.msra.gmra.mrb[0].mxu0 %vm317_vm0, %v299_v3  ;;  %v483_v7 = vld [vmem:[#allocation10 + $0x80] sm:$0xff]  ;;  %v484_v8 = vld [vmem:[#allocation10 + $0x88] sm:$0xff]  ;;  %v837_v15 = vpack.c.bf16 %v486_v14, %v485_v13  ;;  %v469_v16 = vld [vmem:[#allocation10 + $0x10] sm:$0xff] }
  0xa0   : > { %400 = vmatprep.mubr.f32.mxu0 %v1246_v0  ;;  %v833_v9 = vpack.c.bf16 %v484_v8, %v483_v7  ;;  %v467_v10 = vld [vmem:[#allocation10] sm:$0xff]  ;;  %v468_v11 = vld [vmem:[#allocation10 + $0x8] sm:$0xff]  ;;  %v470_v17 = vld [vmem:[#allocation10 + $0x18] sm:$0xff]  ;;  %v309_v57 = vsub.s32 0, %v308_v56  ;;  %v313_v59 = vsub.s32 1, %v308_v56 }
  0xa1   : > { %v835_v12 = vpack.c.bf16 %v468_v11, %v467_v10  ;;  %v839_v18 = vpack.c.bf16 %v470_v17, %v469_v16  ;;  %v487_v19 = vld [vmem:[#allocation10 + $0xa0] sm:$0xff]  ;;  %v488_v20 = vld [vmem:[#allocation10 + $0xa8] sm:$0xff]  ;;  %v489_v25 = vld [vmem:[#allocation10 + $0xb0] sm:$0xff] }
  0xa2   : > { %834 = vmatprep.subr.bf16.mxu0 %v833_v9  ;;  %865 = vmatprep.subr.bf16.mxu1 %v833_v9  ;;  %v841_v21 = vpack.c.bf16 %v488_v20, %v487_v19  ;;  %v471_v22 = vld [vmem:[#allocation10 + $0x20] sm:$0xff]  ;;  %v472_v23 = vld [vmem:[#allocation10 + $0x28] sm:$0xff]  ;;  %v490_v26 = vld [vmem:[#allocation10 + $0xb8] sm:$0xff]  ;;  %p780_p4 = scmp.ne.s32.totalorder %s1516_s30, 1 }
  0xa3   : > { %776 = vmatmul.mubr.msk.f32.gmra.mrb[2].mxu0 %vm317_vm0, %v300_v4  ;;  %873 = vmatpush3.bf16.msra.mxu1 %v835_v12  ;;  %v843_v24 = vpack.c.bf16 %v472_v23, %v471_v22  ;;  %v845_v27 = vpack.c.bf16 %v490_v26, %v489_v25  ;;  %v473_v28 = vld [vmem:[#allocation10 + $0x30] sm:$0xff]  ;;  %v474_v29 = vld [vmem:[#allocation10 + $0x38] sm:$0xff]  ;;  %v491_v31 = vld [vmem:[#allocation10 + $0xc0] sm:$0xff] }
  0xa4   : > { %406 = vmatprep.mubr.f32.mxu0 %v1246_v0  ;;  %836 = vmatpush3.bf16.msra.mxu0 %v835_v12  ;;  %v847_v30 = vpack.c.bf16 %v474_v29, %v473_v28  ;;  %v492_v32 = vld [vmem:[#allocation10 + $0xc8] sm:$0xff]  ;;  %v475_v34 = vld [vmem:[#allocation10 + $0x40] sm:$0xff]  ;;  %v493_v37 = vld [vmem:[#allocation10 + $0xd0] sm:$0xff] }
  0xa5   : > { %838 = vmatprep.subr.bf16.mxu0 %v837_v15  ;;  %866 = vmatprep.subr.bf16.mxu1 %v837_v15  ;;  %v849_v33 = vpack.c.bf16 %v492_v32, %v491_v31  ;;  %v476_v35 = vld [vmem:[#allocation10 + $0x48] sm:$0xff]  ;;  %v494_v38 = vld [vmem:[#allocation10 + $0xd8] sm:$0xff]  ;;  %v477_v40 = vld [vmem:[#allocation10 + $0x50] sm:$0xff] }
  0xa6   : > { %v851_v36 = vpack.c.bf16 %v476_v35, %v475_v34  ;;  %v853_v39 = vpack.c.bf16 %v494_v38, %v493_v37  ;;  %v478_v41 = vld [vmem:[#allocation10 + $0x58] sm:$0xff]  ;;  %v495_v43 = vld [vmem:[#allocation10 + $0xe0] sm:$0xff]  ;;  %v496_v44 = vld [vmem:[#allocation10 + $0xe8] sm:$0xff] }
  0xa7   : > { %777 = vmatmul.mubr.msk.f32.gmra.mrb[4].mxu0 %vm317_vm0, %v301_v5  ;;  %874 = vmatpush3.bf16.msra.mxu1 %v839_v18  ;;  %v855_v42 = vpack.c.bf16 %v478_v41, %v477_v40  ;;  %v857_v45 = vpack.c.bf16 %v496_v44, %v495_v43  ;;  %v479_v46 = vld [vmem:[#allocation10 + $0x60] sm:$0xff]  ;;  %v480_v47 = vld [vmem:[#allocation10 + $0x68] sm:$0xff]  ;;  %v497_v49 = vld [vmem:[#allocation10 + $0xf0] sm:$0xff] }
  0xa8   : > { %412 = vmatprep.mubr.f32.mxu0 %v1246_v0  ;;  %840 = vmatpush3.bf16.msra.mxu0 %v839_v18  ;;  %v859_v48 = vpack.c.bf16 %v480_v47, %v479_v46  ;;  %v498_v50 = vld [vmem:[#allocation10 + $0xf8] sm:$0xff]  ;;  %v481_v52 = vld [vmem:[#allocation10 + $0x70] sm:$0xff]  ;;  %v779_v55 = vld [vmem:[#allocation12] ss:$0 sm:$0xff] }
  0xa9   : > { %842 = vmatprep.subr.bf16.mxu0 %v841_v21  ;;  %867 = vmatprep.subr.bf16.mxu1 %v841_v21  ;;  %v861_v51 = vpack.c.bf16 %v498_v50, %v497_v49  ;;  %v482_v53 = vld [vmem:[#allocation10 + $0x78] sm:$0xff] }
  0xaa   : > { %v863_v54 = vpack.c.bf16 %v482_v53, %v481_v52  ;;  %v305_v58 = vld [vmem:[#allocation9] sm:$0x3] }
  0xab   : > { %778 = vmatmul.mubr.msk.f32.gmra.mrb[6].mxu0 %vm317_vm0, %v302_v6  ;;  %875 = vmatpush3.bf16.msra.mxu1 %v843_v24  ;;  %v310_v60 = vrot.slane %v305_v58, %v309_v57  ;;  %v314_v61 = vrot.slane %v305_v58, %v313_v59 }
  0xac   : > { %844 = vmatpush3.bf16.msra.mxu0 %v843_v24  ;;  %868 = vmatprep.subr.bf16.mxu1 %v845_v27 }
  0xad   : > { %846 = vmatprep.subr.bf16.mxu0 %v845_v27 }
  0xaf   : > { %876 = vmatpush3.bf16.msra.mxu1 %v847_v30 }
  0xb0   : > { %848 = vmatpush3.bf16.msra.mxu0 %v847_v30  ;;  %869 = vmatprep.subr.bf16.mxu1 %v849_v33 }
  0xb1   : > { %850 = vmatprep.subr.bf16.mxu0 %v849_v33 }
  0xb3   : > { %877 = vmatpush3.bf16.msra.mxu1 %v851_v36 }
  0xb4   : > { %852 = vmatpush3.bf16.msra.mxu0 %v851_v36  ;;  %870 = vmatprep.subr.bf16.mxu1 %v853_v39 }
  0xb5   : > { %854 = vmatprep.subr.bf16.mxu0 %v853_v39 }
  0xb7   : > { %878 = vmatpush3.bf16.msra.mxu1 %v855_v42 }
  0xb8   : > { %856 = vmatpush3.bf16.msra.mxu0 %v855_v42  ;;  %871 = vmatprep.subr.bf16.mxu1 %v857_v45 }
  0xb9   : > { %858 = vmatprep.subr.bf16.mxu0 %v857_v45 }
  0xbb   : > { %879 = vmatpush3.bf16.msra.mxu1 %v859_v48 }
  0xbc   : > { %860 = vmatpush3.bf16.msra.mxu0 %v859_v48  ;;  %872 = vmatprep.subr.bf16.mxu1 %v861_v51 }
  0xbd   : > { %862 = vmatprep.subr.bf16.mxu0 %v861_v51 }
  0xbf   : > { %880 = vmatpush3.bf16.msra.mxu1 %v863_v54 }
  0xc0   : > { %864 = vmatpush3.bf16.msra.mxu0 %v863_v54 }
 0x172   : > { %v396_v62 = vpop.f32.mrb[0].mxu0 }
 0x173   : > { %v397_v63 = vadd.f32 %v396_v62, %v310_v60  ;;  %v398_v0 = vpop.f32.mrb[1].mxu0 }
 0x174   : > { %v399_v1 = vadd.f32 %v398_v0, %v314_v61 }
 0x175   : > { %v419_v2 = vsub.f32 0.0, %v397_v63 }
 0x176   : > { %v420_v3 = vsub.f32 0.0, %v399_v1  ;;  %v402_v4 = vpop.f32.mrb[2].mxu0 }
 0x177   : > { %v427_v5 = vmul.f32 1.442695, %v419_v2  ;;  %v403_v6 = vadd.f32 %v402_v4, %v310_v60  ;;  %v404_v7 = vpop.f32.mrb[3].mxu0 }
 0x178   : > { %v429_v8 = vmul.f32 1.442695, %v420_v3  ;;  %v405_v9 = vadd.f32 %v404_v7, %v314_v61 }
 0x179   : > { %973 = vpow2.f32 %v427_v5  ;;  %v421_v10 = vsub.f32 0.0, %v403_v6 }
 0x17a   : > { %975 = vpow2.f32 %v429_v8  ;;  %v422_v11 = vsub.f32 0.0, %v405_v9  ;;  %v408_v12 = vpop.f32.mrb[4].mxu0 }
 0x17b   : > { %v431_v13 = vmul.f32 1.442695, %v421_v10  ;;  %v409_v14 = vadd.f32 %v408_v12, %v310_v60  ;;  %v410_v15 = vpop.f32.mrb[5].mxu0 }
 0x17c   : > { %v433_v16 = vmul.f32 1.442695, %v422_v11  ;;  %v411_v17 = vadd.f32 %v410_v15, %v314_v61 }
 0x17d   : > { %977 = vpow2.f32 %v431_v13  ;;  %v423_v18 = vsub.f32 0.0, %v409_v14 }
 0x17e   : > { %979 = vpow2.f32 %v433_v16  ;;  %v424_v19 = vsub.f32 0.0, %v411_v17  ;;  %v414_v20 = vpop.f32.mrb[6].mxu0 }
 0x17f   : > { %v435_v21 = vmul.f32 1.442695, %v423_v18  ;;  %v415_v22 = vadd.f32 %v414_v20, %v310_v60  ;;  %v416_v23 = vpop.f32.mrb[7].mxu0 }
 0x180   : > { %v437_v24 = vmul.f32 1.442695, %v424_v19  ;;  %v417_v25 = vadd.f32 %v416_v23, %v314_v61 }
 0x181   : > { %981 = vpow2.f32 %v435_v21  ;;  %v425_v26 = vsub.f32 0.0, %v415_v22 }
 0x182   : > { %983 = vpow2.f32 %v437_v24  ;;  %v426_v27 = vsub.f32 0.0, %v417_v25 }
 0x183   : > { %v974_v28 = vpop.eup %973  ;;  %v439_v29 = vmul.f32 1.442695, %v425_v26 }
 0x184   : > { %v976_v30 = vpop.eup %975  ;;  %v443_v31 = vadd.f32 1.0, %v974_v28  ;;  %v441_v32 = vmul.f32 1.442695, %v426_v27 }
 0x185   : > { %v444_v33 = vadd.f32 1.0, %v976_v30  ;;  %985 = vpow2.f32 %v439_v29 }
 0x186   : > { %987 = vrcp.f32 %v443_v31 }
 0x187   : > { %v978_v34 = vpop.eup %977  ;;  %989 = vrcp.f32 %v444_v33 }
 0x188   : > { %v980_v35 = vpop.eup %979  ;;  %v445_v36 = vadd.f32 1.0, %v978_v34  ;;  %991 = vpow2.f32 %v441_v32 }
 0x189   : > { %v446_v37 = vadd.f32 1.0, %v980_v35 }
 0x18b   : > { %v982_v38 = vpop.eup %981  ;;  %993 = vrcp.f32 %v446_v37 }
 0x18c   : > { %v984_v39 = vpop.eup %983  ;;  %995 = vrcp.f32 %v445_v36  ;;  %v447_v40 = vadd.f32 1.0, %v982_v38 }
 0x18d   : > { %v448_v41 = vadd.f32 1.0, %v984_v39 }
 0x18f   : > { %v986_v42 = vpop.eup %985  ;;  %997 = vrcp.f32 %v448_v41 }
 0x190   : > { %v988_v43 = vpop.eup %987  ;;  %999 = vrcp.f32 %v447_v40  ;;  %v449_v46 = vadd.f32 1.0, %v986_v42 }
 0x191   : > { %v990_v44 = vpop.eup %989 }
 0x192   : > { %v992_v45 = vpop.eup %991  ;;  %570 = vmatprep.mubr.f32.mxu0 %v990_v44 }
 0x193   : > { %v450_v47 = vadd.f32 1.0, %v992_v45  ;;  %571 = vmatmul.mubr.f32.vlgmr.msra.gmra.mrb[8].mxu0 %v988_v43 }
 0x195   : > { %v994_v48 = vpop.eup %993  ;;  %1001 = vrcp.f32 %v450_v47 }
 0x196   : > { %v996_v49 = vpop.eup %995  ;;  %1003 = vrcp.f32 %v449_v46  ;;  %575 = vmatprep.mubr.f32.mxu1 %v994_v48 }
 0x197   : > { %576 = vmatmul.mubr.f32.vlgmr.msra.gmra.mrb[0].mxu1 %v996_v49 }
 0x199   : > { %v998_v50 = vpop.eup %997 }
 0x19a   : > { %v1000_v51 = vpop.eup %999  ;;  %580 = vmatprep.mubr.f32.mxu1 %v998_v50 }
 0x19b   : > { %581 = vmatmul.mubr.f32.gmra.mrb[2].mxu1 %v1000_v51 }
 0x19f   : > { %v1002_v52 = vpop.eup %1001 }
 0x1a0   : > { %v1004_v53 = vpop.eup %1003  ;;  %585 = vmatprep.mubr.f32.mxu1 %v1002_v52 }
 0x1a1   : > { %586 = vmatmul.mubr.f32.gmra.mrb[4].mxu1 %v1004_v53 }
 0x266   : > { %v821_v54 = vpop.f32.mrb[8].mxu0 }
 0x267   : > { %v822_v56 = vpop.f32.mrb[9].mxu0 }
 0x268   : > { %v823_v57 = vadd.f32 %v822_v56, %v821_v54 }
 0x26a   : > { %v573_v58 = vadd.f32 %v823_v57, %v779_v55  ;;  %v824_v59 = vpop.f32.mrb[0].mxu1 }
 0x26b   : > { %v825_v60 = vpop.f32.mrb[1].mxu1 }
 0x26c   : > { %v826_v61 = vadd.f32 %v825_v60, %v824_v59  ;;  %v596_v7 = vsub.f32 (!%p780_p4), 0.0, %v573_v58 }
 0x26e   : > { %v578_v62 = vadd.f32 %v826_v61, %v779_v55  ;;  %v827_v63 = vpop.f32.mrb[2].mxu1  ;;  %v600_v11 = vmul.f32 (!%p780_p4), 1.442695, %v596_v7 }
 0x26f   : > { %v828_v0 = vpop.f32.mrb[3].mxu1 }
 0x270   : > { %v829_v1 = vadd.f32 %v828_v0, %v827_v63  ;;  %v597_v8 = vsub.f32 (!%p780_p4), 0.0, %v578_v62  ;;  %1005 = vpow2.f32 (!%p780_p4), %v600_v11 }
 0x272   : > { %v583_v2 = vadd.f32 %v829_v1, %v779_v55  ;;  %595 = sbr.rel (%p780_p4) target bundleno = 663 (0x297), region = 64  ;;  %v602_v12 = vmul.f32 (!%p780_p4), 1.442695, %v597_v8 }
 0x274   : > { %v830_v3 = vpop.f32.mrb[4].mxu1  ;;  %v598_v9 = vsub.f32 (!%p780_p4), 0.0, %v583_v2  ;;  %1007 = vpow2.f32 (!%p780_p4), %v602_v12 }
 0x275   : > { %v831_v4 = vpop.f32.mrb[5].mxu1 }
 0x276   : > { %v832_v5 = vadd.f32 %v831_v4, %v830_v3  ;;  %v604_v13 = vmul.f32 (!%p780_p4), 1.442695, %v598_v9 }
 0x278   : > { %v588_v6 = vadd.f32 %v832_v5, %v779_v55  ;;  %1009 = vpow2.f32 (!%p780_p4), %v604_v13 }
 0x27a   : > { %v599_v10 = vsub.f32 0.0, %v588_v6  ;;  %v1006_v15 = vpop.eup %1005 }
 0x27b   : > { %v608_v17 = vadd.f32 1.0, %v1006_v15 }
 0x27c   : > { %v606_v14 = vmul.f32 1.442695, %v599_v10 }
 0x27e   : > { %1011 = vpow2.f32 %v606_v14  ;;  %v1008_v16 = vpop.eup %1007 }
 0x27f   : > { %v609_v19 = vadd.f32 1.0, %v1008_v16  ;;  %1013 = vrcp.f32 %v608_v17 }
 0x281   : > { %1015 = vrcp.f32 %v609_v19 }
 0x282   : > { %v1010_v18 = vpop.eup %1009 }
 0x283   : > { %v610_v21 = vadd.f32 1.0, %v1010_v18 }
 0x285   : > { %1017 = vrcp.f32 %v610_v21 }
 0x288   : > { %v1012_v20 = vpop.eup %1011 }
 0x289   : > { %v611_v22 = vadd.f32 1.0, %v1012_v20  ;;  %v1014_v23 = vpop.eup %1013 }
 0x28a   : > { %620 = vst.msk [vmem:[%s1524_s28] sm:$0xff] %vm317_vm0, %v1014_v23 }
 0x28b   : > { %1019 = vrcp.f32 %v611_v22  ;;  %v1016_v24 = vpop.eup %1015 }
 0x28c   : > { %621 = vst.msk [vmem:[%s1524_s28 + $0x8] sm:$0xff] %vm317_vm0, %v1016_v24 }
 0x28f   : > { %v1018_v25 = vpop.eup %1017 }
 0x290   : > { %622 = vst.msk [vmem:[%s1524_s28 + $0x10] sm:$0xff] %vm317_vm0, %v1018_v25 }
 0x295   : > { %v1020_v26 = vpop.eup %1019 }
 0x296   : > { %623 = vst.msk [vmem:[%s1524_s28 + $0x18] sm:$0xff] %vm317_vm0, %v1020_v26 }
 0x297 PF: > { %s624_s20 = sld [smem:[#allocation3]] }
 0x29d   : > { %p781_p6 = scmp.ne.s32.totalorder %s624_s20, 0 }
 0x29e   : > { %629 = vst.msk [vmem:[%s1524_s28] sm:$0xff] (!%p781_p6), %vm317_vm0, %v573_v58  ;;  %630 = vst.msk [vmem:[%s1524_s28 + $0x8] sm:$0xff] (!%p781_p6), %vm317_vm0, %v578_v62 }
 0x29f   : > { %628 = sbr.rel (%p781_p6) target bundleno = 678 (0x2a6), region = 68  ;;  %631 = vst.msk [vmem:[%s1524_s28 + $0x10] sm:$0xff] (!%p781_p6), %vm317_vm0, %v583_v2  ;;  %632 = vst.msk [vmem:[%s1524_s28 + $0x18] sm:$0xff] (!%p781_p6), %vm317_vm0, %v588_v6 }
 0x2a6 PF: > { %s788_s21 = sshll.u32 %s1309_s0, 9  ;;  %s647_s16 = sshll.u32 %s1524_s28, 4  ;;  %s1550_s16 = int_to_ptr.vmem [resolvable:$true] %s647_s16 }
 0x2a7   : > { %s1547_s8 = scalar_lea.hbm %s1600_s6, %s788_s21  ;;  %s634_s12 = scalar_lea.sflag [#allocation6], %s1498_s22 }
 0x2a8   : > { %s1163_s13 = scalar_lea.vmem %s1550_s16, 512  ;;  %s1247_s11 = smov [#allocation13]  }
 0x2a9   : > { %p1164_p8 = scmp.ne.s32.totalorder %s1550_s16, %s1163_s13  ;;  %s1167_s14 = sshll.u32 %s1247_s11, 4  ;;  %s1168_s14 = int_to_ptr.vmem [resolvable:$false] %s1167_s14 }
 0x2aa   : > { %s1169_s0 = scalar_lea.vmem %s1168_s14, 1024  ;;  %p1170_p10 = scmp.lt.s32.totalorder %s1550_s16, %s1168_s14 }
 0x2ab   : > { %p1165_p3 = pnand %p1164_p8, %p1443_p1  ;;  %p1171_p13 = scmp.lt.s32.totalorder %s1169_s0, %s1163_s13 }
 0x2ad   : > { %p1166_p7 = pneg %p1165_p3  ;;  %p1172_p0 = por %p1171_p13, %p1170_p10 }
 0x2af   : > { %p1173_p5 = pnand %p1172_p0, %p1166_p7 }
 0x2b1   : > { %1176 = shalt.err (!%p1173_p5)
}
 0x2b2   : > { %s1177_s27 = scalar_lea.hbm %s1547_s8, 512  ;;  %s1181_s30 = scalar_lea.hbm %s1600_s6, 1024 }
 0x2b3   : > { %p1178_p11 = scmp.ne.s32.totalorder %s1547_s8, %s1177_s27  ;;  %p1182_p2 = scmp.lt.u32.totalorder %s1547_s8, %s1600_s6 }
 0x2b4   : > { %p1183_p4 = scmp.lt.u32.totalorder %s1181_s30, %s1177_s27  ;;  %p1185_p8 = scmp.lt.u32.totalorder %s1177_s27, %s1547_s8 }
 0x2b5   : > { %p1179_p9 = pnand %p1178_p11, %p1443_p1 }
 0x2b6   : > { %p1184_p6 = por %p1183_p4, %p1182_p2 }
 0x2b7   : > { %p1180_p12 = pneg %p1179_p9 }
 0x2b8   : > { %p1186_p3 = por %p1185_p8, %p1184_p6 }
 0x2ba   : > { %p1187_p7 = pnand %p1186_p3, %p1180_p12 }
 0x2bc   : > { %1190 = shalt.err (!%p1187_p7)
}
 0x2bd   : > { %s1248_s21 = smov 128   ;;  %s1249_s17 = smov 8  }
 0x2be   : > { %899 = dma.vmem_to_hbm [thread:$0]  (%p1443_p1), %s1550_s16, 512, %s1547_s8, %s634_s12, %s1248_s21, %s1248_s21, %s1249_s17  }
 0x2bf PF: > { %s662_s18 = sand.u32 1, %s1225_s23   ;;  %p1618_p10 = scmp.ne.s32.totalorder %s1605_s29, 0 }
 0x2c0   : > { %p1619_p13 = scmp.ge.s32.totalorder %s1237_s26, 2  ;;  %s663_s13 = scalar_lea.sflag [#allocation6], %s662_s18 }
 0x2c2   : > { %p919_p0 = pnand %p1619_p13, %p1618_p10 }
 0x2c4   : > { %1220 = dma.done.wait (!%p919_p0), %s663_s13, 512  }
 0x2c5   : > { %1222 = vsyncadd (!%p919_p0), %s663_s13, 4294966784  ;;  %p22_p5 = scmp.ge.s32.totalorder %s1433_s19, 4   ;;  %s1620_s23 = smov %s1229_s24 }
 0x2c6   : > { %s1621_s24 = smov %s1233_s25  ;;  %s1622_s25 = smov %s1449_s9 }
 0x2c7   : > { %s1623_s26 = smov %s1433_s19  ;;  %24 = sbr.rel (!%p22_p5) target bundleno = 9 (0x9), region = 109 }
 0x2ce   :  { %668 = vsyncpa [#allocation5], 1 }
 0x2cf   :  { %670 = vsyncpa [#allocation5 + $0x1], 1 }
 0x2d0   :  { %671 = vsyncpa [#allocation8], 1 }
 0x2d1   :  { %672 = vsyncpa [#allocation11], 1 }
 0x2d2   :  { %673 = vsyncpa [#allocation6], 1 }
 0x2d3   :  { %675 = vsyncpa [#allocation6 + $0x1], 1 }

</bundles_post_ra>
